<compile_context>
chip_gen: v7x
topology: tpu7x:2x2x1
jax: 0.10.0
libtpu: 0.0.40
codegen_flags: <defaults>
</compile_context>

<pallas_src>
import jax
import jax.numpy as jnp
from jax.experimental import pallas as pl
from jax.experimental.pallas import tpu as pltpu

_LANES = 128
_FEAT = 16
_COPIES = _LANES // _FEAT  # 8 batch rows packed per 128-lane row


def fused_affine_kernel(x_ref, w_ref, b_ref, o_ref):
    """Single lane-dense affine map: o = x @ W + b.

    x_ref: [TM, 128]   (8 batch rows of 16 features packed per lane-dense row)
    w_ref: [128, 128]  (block-diagonal, 8 copies of the fused 16x16 weight)
    b_ref: [1, 128]    (fused bias tiled 8x)
    """
    o_ref[...] = (
        jnp.dot(x_ref[...], w_ref[...], preferred_element_type=jnp.float32)
        + b_ref[...]
    ).astype(o_ref.dtype)


def net_forward(x, w1, b1, w2, b2=None, *, choice1=0, choice2=1, tm=512):
    """Forward pass of Net with LayerChoice indices fixed at trace time.

    choice == 0 -> nn.Linear(16, 16) (with bias)
    choice == 1 -> nn.Linear(16, 16, bias=False)
    """
    B, F = x.shape
    assert F == _FEAT and w1.shape == (_FEAT, _FEAT) and w2.shape == (_FEAT, _FEAT)
    dtype = x.dtype

    # ---- Algebraic fusion of the two linears (computed once, outside) ----
    # y = (x @ W1.T [+ b1]) @ W2.T [+ b2]  ==  x @ Wc + bc
    wc = (w1.T.astype(jnp.float32) @ w2.T.astype(jnp.float32))          # [16, 16]
    bc = jnp.zeros((_FEAT,), jnp.float32)
    if choice1 == 0:
        bc = bc + b1.astype(jnp.float32) @ w2.T.astype(jnp.float32)
    if choice2 == 0:
        assert b2 is not None
        bc = bc + b2.astype(jnp.float32)

    # ---- Lane-dense block-diagonal packing (8 copies of Wc) ----
    wbd = jnp.kron(jnp.eye(_COPIES, dtype=jnp.float32), wc).astype(dtype)  # [128,128]
    bbd = jnp.tile(bc, _COPIES).reshape(1, _LANES).astype(dtype)           # [1,128]

    # ---- Reshape x [B,16] -> [rows,128] (free, identical row-major layout),
    #      padding the batch so it tiles evenly over the grid. ----
    rows = pl.cdiv(B, _COPIES)
    if rows <= tm:
        tm_rows, grid_m = rows, 1
    else:
        tm_rows, grid_m = tm, pl.cdiv(rows, tm)          # tm is a multiple of 8
    rows_pad = tm_rows * grid_m
    b_pad = rows_pad * _COPIES
    if b_pad != B:
        x = jnp.pad(x, ((0, b_pad - B), (0, 0)))
    xr = x.reshape(rows_pad, _LANES)

    out = pl.pallas_call(
        fused_affine_kernel,
        out_shape=jax.ShapeDtypeStruct((rows_pad, _LANES), dtype),
        grid=(grid_m,),
        in_specs=[
            pl.BlockSpec((tm_rows, _LANES), lambda i: (i, 0)),   # x tile (pipelined)
            pl.BlockSpec((_LANES, _LANES), lambda i: (0, 0)),    # weight (resident)
            pl.BlockSpec((1, _LANES), lambda i: (0, 0)),         # bias   (resident)
        ],
        out_specs=pl.BlockSpec((tm_rows, _LANES), lambda i: (i, 0)),
        compiler_params=pltpu.CompilerParams(
            dimension_semantics=("parallel",)),
    )(xr, wbd, bbd)

    return out.reshape(b_pad, _FEAT)[:B]


if __name__ == "__main__":
    key = jax.random.PRNGKey(0)
    kx, kw1, kb1, kw2 = jax.random.split(key, 4)

    # Deterministic parameter init (Kaiming-uniform-ish bound = 1/sqrt(fan_in))
    bound = 1.0 / jnp.sqrt(16.0)
    w1 = jax.random.uniform(kw1, (16, 16), jnp.float32, -bound, bound)
    b1 = jax.random.uniform(kb1, (16,), jnp.float32, -bound, bound)
    w2 = jax.random.uniform(kw2, (16, 16), jnp.float32, -bound, bound)

    # Small case matching the module's natural usage.
    B = 8
    x = jax.random.normal(kx, (B, 16), dtype=jnp.float32)
    out = jax.block_until_ready(net_forward(x, w1, b1, w2))
    ref = (x @ w1.T + b1) @ w2.T
    assert out.shape == (B, 16)
    assert jnp.allclose(out, ref, atol=1e-4, rtol=1e-4)

    # Larger, non-multiple-of-8 batch to exercise the tiled / pipelined /
    # "parallel" grid path with padding + final slice.
    B2 = 8200
    x2 = jax.random.normal(kx, (B2, 16), dtype=jnp.float32)
    out2 = jax.block_until_ready(net_forward(x2, w1, b1, w2))
    ref2 = (x2 @ w1.T + b1) @ w2.T
    assert out2.shape == (B2, 16)
    assert jnp.allclose(out2, ref2, atol=1e-4, rtol=1e-4)

    # TODO(synk): nn.LayerChoice is a NAS mutation point; the choice indices
    # are fixed at trace time via wrapper args rather than selected at runtime.
    print("KERNEL_OK")
</pallas_src>

<mosaic_0001>
module attributes {stable_mosaic.version = 11 : i64} {
  func.func @fused_affine_kernel(%arg0: i32, %arg1: memref<1x128xf32, #tpu.memory_space<vmem>>, %arg2: memref<128x128xf32, #tpu.memory_space<vmem>>, %arg3: memref<1x128xf32, #tpu.memory_space<vmem>>, %arg4: memref<1x128xf32, #tpu.memory_space<vmem>>) attributes {dimension_semantics = [#tpu.dimension_semantics<parallel>], iteration_bounds = array<i64: 1>, scalar_prefetch = 0 : i64, scratch_operands = 0 : i64, tpu.core_type = #tpu.core_type<tc>, window_params = [{transform_indices = @transform_0, window_bounds = array<i64: 1, 128>}, {pipeline_mode = #tpu.pipeline_mode<synchronous>, transform_indices = @transform_1, window_bounds = array<i64: 128, 128>}, {pipeline_mode = #tpu.pipeline_mode<synchronous>, transform_indices = @transform_2, window_bounds = array<i64: 1, 128>}, {transform_indices = @transform_3, window_bounds = array<i64: 1, 128>}]} {
    %c0 = arith.constant 0 : index
    %c0_0 = arith.constant 0 : index
    %0 = vector.load %arg1[%c0, %c0_0] : memref<1x128xf32, #tpu.memory_space<vmem>>, vector<1x128xf32>
    %c0_1 = arith.constant 0 : index
    %c0_2 = arith.constant 0 : index
    %1 = vector.load %arg2[%c0_1, %c0_2] : memref<128x128xf32, #tpu.memory_space<vmem>>, vector<128x128xf32>
    %cst = arith.constant dense<0.000000e+00> : vector<1x128xf32>
    %2 = tpu.matmul %0, %1, %cst {dimension_numbers = #tpu.dot_dimension_numbers<[1], [0], [0], [1], [0, 0, 1, 1], [], []>} : vector<1x128xf32>, vector<128x128xf32>, vector<1x128xf32> -> vector<1x128xf32>
    %c0_3 = arith.constant 0 : index
    %c0_4 = arith.constant 0 : index
    %3 = vector.load %arg3[%c0_3, %c0_4] : memref<1x128xf32, #tpu.memory_space<vmem>>, vector<1x128xf32>
    %4 = arith.addf %2, %3 : vector<1x128xf32>
    %c0_5 = arith.constant 0 : index
    %c0_6 = arith.constant 0 : index
    %5 = vector.load %arg4[%c0_5, %c0_6] : memref<1x128xf32, #tpu.memory_space<vmem>>, vector<1x128xf32>
    tpu.vector_store %arg4[%c0_5, %c0_6], %4 {strides = array<i32>} : memref<1x128xf32, #tpu.memory_space<vmem>>, vector<1x128xf32>,
    return
  }
  func.func @transform_0(%arg0: i32) -> (i32, i32) {
    %c0_i32 = arith.constant 0 : i32
    %c0_i32_0 = arith.constant 0 : i32
    return %arg0, %c0_i32 : i32, i32
  }
  func.func @transform_1(%arg0: i32) -> (i32, i32) {
    %c0_i32 = arith.constant 0 : i32
    %c0_i32_0 = arith.constant 0 : i32
    %c0_i32_1 = arith.constant 0 : i32
    return %c0_i32, %c0_i32_0 : i32, i32
  }
  func.func @transform_2(%arg0: i32) -> (i32, i32) {
    %c0_i32 = arith.constant 0 : i32
    %c0_i32_0 = arith.constant 0 : i32
    %c0_i32_1 = arith.constant 0 : i32
    return %c0_i32, %c0_i32_0 : i32, i32
  }
  func.func @transform_3(%arg0: i32) -> (i32, i32) {
    %c0_i32 = arith.constant 0 : i32
    %c0_i32_0 = arith.constant 0 : i32
    return %arg0, %c0_i32 : i32, i32
  }
}

</mosaic_0001>

<bundles_post_ra>
// kernel: tpu_custom_call.1
= control target key start
LH: loop header
LB: loop body
LE: loop exit
PB: predicated region body
PF: predicated region fallthrough
CT: control target
= control target key end

     0   :  { %8 = vsyncpa [#allocation3], 0  ;;  %s376_s0 = inlined_call_operand.hbm [shape: f32[1,128], index: 0, kind: input, shape index: {}]   ;;  %s377_s1 = inlined_call_operand.hbm [shape: f32[128,128], index: 1, kind: input, shape index: {}]   ;;  %s378_s2 = inlined_call_operand.vmem [shape: f32[1,128], index: 2, kind: input, shape index: {}]   ;;  %s379_s3 = inlined_call_operand.hbm [shape: f32[1,128], index: 3, kind: output, shape index: {}]  }
   0x1   :  { %9 = vsyncpa [#allocation6], 0 }
   0x2   :  { %10 = vsyncpa [#allocation4], 0  ;;  %s302_s12 = smov [#allocation2]   ;;  %s303_s14 = smov [#allocation5]  }
   0x3   :  { %s17_s13 = sshll.u32 %s302_s12, 4  ;;  %s26_s15 = sshll.u32 %s303_s14, 4  ;;  %s18_s13 = int_to_ptr.vmem [resolvable:$true] %s17_s13  ;;  %s330_s15 = int_to_ptr.vmem [resolvable:$true] %s26_s15 }
   0x4   :  { %s230_s18 = scalar_lea.hbm %s376_s0, 16 }
   0x5   :  { %p231_p0 = scmp.ne.s32.totalorder %s376_s0, %s230_s18  ;;  %p234_p1 = scmp.lt.u32.totalorder %s230_s18, %s376_s0 }
   0x7   :  { %p236_p2 = pnand %p234_p1, %p231_p0 }
   0x9   :  { %239 = shalt.err (!%p236_p2)
}
   0xa   :  { %s240_s23 = scalar_lea.vmem %s18_s13, 16  ;;  %s244_s24 = scalar_lea.vmem %s18_s13, 32 }
   0xb   :  { %p241_p3 = scmp.ne.s32.totalorder %s18_s13, %s240_s23  ;;  %p245_p4 = scmp.lt.s32.totalorder %s18_s13, %s18_s13 }
   0xc   :  { %p246_p5 = scmp.lt.s32.totalorder %s244_s24, %s240_s23 }
   0xe   :  { %p247_p6 = por %p246_p5, %p245_p4 }
  0x10   :  { %p248_p7 = pnand %p247_p6, %p241_p3 }
  0x12   :  { %251 = shalt.err (!%p248_p7)
}
  0x13   :  { %20 = dma.hbm_to_vmem [thread:$0]  %s376_s0, 16, %s18_s13, [#allocation3]  }
  0x14   :  { %s252_s29 = scalar_lea.hbm %s377_s1, 2048 }
  0x15   :  { %p253_p8 = scmp.ne.s32.totalorder %s377_s1, %s252_s29  ;;  %p256_p9 = scmp.lt.u32.totalorder %s252_s29, %s377_s1 }
  0x17   :  { %p258_p10 = pnand %p256_p9, %p253_p8 }
  0x19   :  { %261 = shalt.err (!%p258_p10)
}
  0x1a   :  { %s262_s7 = scalar_lea.vmem %s330_s15, 2048  ;;  %p267_p12 = scmp.lt.s32.totalorder %s330_s15, %s330_s15 }
  0x1b   :  { %p263_p11 = scmp.ne.s32.totalorder %s330_s15, %s262_s7  ;;  %p268_p13 = scmp.lt.s32.totalorder %s262_s7, %s262_s7 }
  0x1d   :  { %p269_p0 = por %p268_p13, %p267_p12 }
  0x1f   :  { %p270_p1 = pnand %p269_p0, %p263_p11 }
  0x21   :  { %273 = shalt.err (!%p270_p1)
}
  0x22   :  { %s304_s0 = smov 128   ;;  %s305_s8 = smov 8  }
  0x23   :  { %32 = dma.hbm_to_vmem [thread:$0]  %s377_s1, 2048, %s330_s15, [#allocation6], %s304_s0, %s304_s0, %s305_s8  }
  0x24   :  { %296 = dma.done.wait [#allocation3], 16  }
  0x25   :  { %297 = vsyncadd [#allocation3], 4294967280 }
  0x26   :  { %298 = dma.done.wait [#allocation6], 2048  }
  0x27   :  { %299 = vsyncadd [#allocation6], 4294965248  ;;  %v306_v0 = vmov 0.0|0.0   ;;  %vm307_vm0 = vmmov 0   ;;  %v308_v1 = vmov 0.0   ;;  %v42_v2 = vld [vmem:[#allocation5] sm:$0xff] }
  0x28   :  { %198 = vmatprep.subr.bf16.mxu0 %v306_v0  ;;  %195 = vmatprep.mubr.msk.f32.mxu0 %vm307_vm0, %v308_v1  ;;  %v43_v3 = vld [vmem:[#allocation5 + $0x8] sm:$0xff]  ;;  %v44_v4 = vld [vmem:[#allocation5 + $0x10] sm:$0xff]  ;;  %v45_v6 = vld [vmem:[#allocation5 + $0x18] sm:$0xff]  ;;  %s309_s12 = smov [#allocation7]  }
  0x29   :  { %v199_v5 = vpack.c.bf16 %v43_v3, %v42_v2  ;;  %v202_v7 = vpack.c.bf16 %v45_v6, %v44_v4  ;;  %v46_v8 = vld [vmem:[#allocation5 + $0x20] sm:$0xff]  ;;  %v47_v9 = vld [vmem:[#allocation5 + $0x28] sm:$0xff]  ;;  %v48_v11 = vld [vmem:[#allocation5 + $0x30] sm:$0xff]  ;;  %s136_s13 = sshll.u32 %s309_s12, 4  ;;  %s137_s13 = int_to_ptr.vmem [resolvable:$true] %s136_s13 }
  0x2a   :  { %v205_v10 = vpack.c.bf16 %v47_v9, %v46_v8  ;;  %v49_v12 = vld [vmem:[#allocation5 + $0x38] sm:$0xff]  ;;  %v50_v14 = vld [vmem:[#allocation5 + $0x40] sm:$0xff]  ;;  %v51_v15 = vld [vmem:[#allocation5 + $0x48] sm:$0xff]  ;;  %s274_s14 = scalar_lea.vmem %s137_s13, 16  ;;  %s278_s15 = scalar_lea.vmem %s137_s13, 32 }
  0x2b   :  { %200 = vmatpush3.bf16.msra.mxu0 %v199_v5  ;;  %v208_v13 = vpack.c.bf16 %v49_v12, %v48_v11  ;;  %v211_v16 = vpack.c.bf16 %v51_v15, %v50_v14  ;;  %v52_v17 = vld [vmem:[#allocation5 + $0x50] sm:$0xff]  ;;  %v53_v18 = vld [vmem:[#allocation5 + $0x58] sm:$0xff]  ;;  %v54_v20 = vld [vmem:[#allocation5 + $0x60] sm:$0xff]  ;;  %p275_p2 = scmp.ne.s32.totalorder %s137_s13, %s274_s14  ;;  %p279_p3 = scmp.lt.s32.totalorder %s137_s13, %s137_s13 }
  0x2c   :  { %201 = vmatprep.subr.bf16.mxu0 %v306_v0  ;;  %v214_v19 = vpack.c.bf16 %v53_v18, %v52_v17  ;;  %v55_v21 = vld [vmem:[#allocation5 + $0x68] sm:$0xff]  ;;  %v56_v23 = vld [vmem:[#allocation5 + $0x70] sm:$0xff]  ;;  %v57_v24 = vld [vmem:[#allocation5 + $0x78] sm:$0xff]  ;;  %p280_p4 = scmp.lt.s32.totalorder %s278_s15, %s274_s14 }
  0x2d   :  { %v217_v22 = vpack.c.bf16 %v55_v21, %v54_v20  ;;  %v220_v25 = vpack.c.bf16 %v57_v24, %v56_v23  ;;  %v41_v26 = vld [vmem:[#allocation2] sm:$0x1] }
  0x2e   :  { %v58_v27 = vld [vmem:[%s378_s2] sm:$0x1]  ;;  %p281_p5 = por %p280_p4, %p279_p3 }
  0x2f   :  { %203 = vmatpush3.bf16.msra.mxu0 %v202_v7 }
  0x30   :  { %204 = vmatprep.subr.bf16.mxu0 %v306_v0  ;;  %p282_p6 = pnand %p281_p5, %p275_p2 }
  0x33   :  { %206 = vmatpush3.bf16.msra.mxu0 %v205_v10 }
  0x34   :  { %207 = vmatprep.subr.bf16.mxu0 %v306_v0 }
  0x37   :  { %209 = vmatpush3.bf16.msra.mxu0 %v208_v13 }
  0x38   :  { %210 = vmatprep.subr.bf16.mxu0 %v306_v0 }
  0x3b   :  { %212 = vmatpush3.bf16.msra.mxu0 %v211_v16 }
  0x3c   :  { %213 = vmatprep.subr.bf16.mxu0 %v306_v0 }
  0x3f   :  { %215 = vmatpush3.bf16.msra.mxu0 %v214_v19 }
  0x40   :  { %216 = vmatprep.subr.bf16.mxu0 %v306_v0 }
  0x43   :  { %218 = vmatpush3.bf16.msra.mxu0 %v217_v22 }
  0x44   :  { %219 = vmatprep.subr.bf16.mxu0 %v306_v0 }
  0x47   :  { %221 = vmatpush3.bf16.msra.mxu0 %v220_v25 }
  0x4a   :  { %196 = vmatmul.mubr.f32.vlgmr.msra.gmra.mrb[0].mxu0 %v41_v26 }
 0x11d   :  { %v125_v28 = vpop.f32.mrb[0].mxu0 }
 0x11e   :  { %v126_v29 = vadd.f32 %v125_v28, %v58_v27  ;;  %v197_v30 = vpop.f32.mrb[1].mxu0 }
 0x120   :  { %129 = vst [vmem:[#allocation7] sm:$0x1] %v126_v29 }
 0x121   :  { %285 = shalt.err (!%p282_p6)
}
 0x122   :  { %s286_s18 = scalar_lea.hbm %s379_s3, 16 }
 0x123   :  { %p287_p7 = scmp.ne.s32.totalorder %s379_s3, %s286_s18  ;;  %p290_p8 = scmp.lt.u32.totalorder %s286_s18, %s379_s3 }
 0x125   :  { %p292_p9 = pnand %p290_p8, %p287_p7 }
 0x127   :  { %295 = shalt.err (!%p292_p9)
}
 0x128   :  { %139 = dma.vmem_to_hbm [thread:$0]  %s137_s13, 16, %s379_s3, [#allocation4]  }
 0x129   :  { %300 = dma.done.wait [#allocation4], 16  }
 0x12a   :  { %301 = vsyncadd [#allocation4], 4294967280 }
 0x12b   :  { %143 = vsyncpa [#allocation3], 1 }
 0x12c   :  { %144 = vsyncpa [#allocation6], 1 }
 0x12d   :  { %145 = vsyncpa [#allocation4], 1 }

</bundles_post_ra>
